<compile_context>
chip_gen: v5e
topology: v5e:2x2
jax: 0.10.0
libtpu: 0.0.40
codegen_flags: <defaults>
</compile_context>

<pallas_src>
import jax
import jax.numpy as jnp
from jax.experimental import pallas as pl
from jax.experimental.pallas import tpu as pltpu

_LANE = 128
# Double-buffered VMEM footprint of one grid step:
#   (input block (b_t,3,r_t,L) + 3 output blocks (b_t,r_t,L)) * 2 buffers
#   = 12 * b_t * r_t * L * itemsize  bytes.
_TARGET_VMEM_BYTES = 24 * 1024 * 1024
_VMEM_LIMIT_BYTES = 32 * 1024 * 1024


def _split_kernel(x_ref, s0_ref, s1_ref, s2_ref):
    # x_ref : (b_t, 3, r_t, L);  s*_ref : (b_t, r_t, L).
    # Static channel index on a non-minor axis -> three pure block copies.
    s0_ref[...] = x_ref[:, 0]
    s1_ref[...] = x_ref[:, 1]
    s2_ref[...] = x_ref[:, 2]


def model_forward(v1):
    """Pallas equivalent of Model.forward: returns (cat, (s0, s1, s2)).

    torch.cat(torch.split(v1, [1,1,1], 1), 1) == v1 exactly, so `cat` is v1
    itself (no extra HBM traffic)."""
    B, C, H, W = v1.shape
    assert C == 3, "Model.forward splits dim=1 into [1,1,1] -> needs 3 channels"
    HW = H * W
    itemsize = jnp.dtype(v1.dtype).itemsize
    # Packed sublane tile: 8 rows for 4-byte, 16 for 2-byte, 32 for 1-byte dtypes.
    pack = 8 * max(1, 4 // itemsize)

    if HW % _LANE == 0:
        R, L = HW // _LANE, _LANE  # lane-dense: full 128-lane stores
    else:
        # TODO(synk): non-multiple-of-128 spatial sizes use W as the lane dim;
        # correct, but not lane-dense when W % 128 != 0.
        R, L = H, W
    x4 = v1.reshape(B, 3, R, L)  # row-major view only, no data movement

    # How many (row x L) rows fit in the double-buffered VMEM budget.
    rows_budget = max(pack, _TARGET_VMEM_BYTES // (12 * L * itemsize))

    if R <= rows_budget:
        r_t = R                                    # full dim (legal for any R)
    else:
        r_t = max(pack, rows_budget - rows_budget % pack)
    b_t = max(1, min(B, rows_budget // max(r_t, 1)))

    # Keep at least 2 grid steps when possible so both v7x TensorCores get work.
    if pl.cdiv(B, b_t) * pl.cdiv(R, r_t) == 1 and B >= 2:
        b_t = pl.cdiv(B, 2)

    grid = (pl.cdiv(B, b_t), pl.cdiv(R, r_t))
    out_shape = jax.ShapeDtypeStruct((B, R, L), v1.dtype)

    s0, s1, s2 = pl.pallas_call(
        _split_kernel,
        out_shape=(out_shape, out_shape, out_shape),
        grid_spec=pltpu.PrefetchScalarGridSpec(
            num_scalar_prefetch=0,
            grid=grid,
            in_specs=[
                pl.BlockSpec((b_t, 3, r_t, L), lambda b, t: (b, 0, t, 0)),
            ],
            out_specs=[
                pl.BlockSpec((b_t, r_t, L), lambda b, t: (b, t, 0)),
                pl.BlockSpec((b_t, r_t, L), lambda b, t: (b, t, 0)),
                pl.BlockSpec((b_t, r_t, L), lambda b, t: (b, t, 0)),
            ],
        ),
        compiler_params=pltpu.CompilerParams(
            dimension_semantics=("parallel", "parallel"),
            vmem_limit_bytes=_VMEM_LIMIT_BYTES,
        ),
    )(x4)

    splits = tuple(s.reshape(B, 1, H, W) for s in (s0, s1, s2))
    return v1, splits


if __name__ == "__main__":
    key = jax.random.PRNGKey(0)

    # Small shape consistent with forward(): batch=2, channels=3, spatial=16.
    v1 = jax.random.normal(key, (2, 3, 16, 16), jnp.float32)

    cat, splits = jax.jit(model_forward)(v1)
    jax.block_until_ready((cat, splits))

    # Sanity checks against a pure-JAX reference.
    ref_splits = (v1[:, 0:1], v1[:, 1:2], v1[:, 2:3])
    ref_cat = jnp.concatenate(ref_splits, axis=1)
    assert cat.shape == (2, 3, 16, 16)
    assert all(s.shape == (2, 1, 16, 16) for s in splits)
    assert jnp.array_equal(cat, ref_cat)
    assert all(jnp.array_equal(a, b) for a, b in zip(splits, ref_splits))

    print("KERNEL_OK")
</pallas_src>

<mosaic_0001>
module attributes {stable_mosaic.version = 11 : i64} {
  func.func @_split_kernel(%arg0: i32, %arg1: i32, %arg2: memref<1x3x2x128xf32, #tpu.memory_space<vmem>>, %arg3: memref<1x2x128xf32, #tpu.memory_space<vmem>>, %arg4: memref<1x2x128xf32, #tpu.memory_space<vmem>>, %arg5: memref<1x2x128xf32, #tpu.memory_space<vmem>>) attributes {dimension_semantics = [#tpu.dimension_semantics<parallel>, #tpu.dimension_semantics<parallel>], iteration_bounds = array<i64: 2, 1>, scalar_prefetch = 0 : i64, scratch_operands = 0 : i64, tpu.core_type = #tpu.core_type<tc>, window_params = [{transform_indices = @transform_0, window_bounds = array<i64: 1, 3, 2, 128>}, {transform_indices = @transform_1, window_bounds = array<i64: 1, 2, 128>}, {transform_indices = @transform_2, window_bounds = array<i64: 1, 2, 128>}, {transform_indices = @transform_3, window_bounds = array<i64: 1, 2, 128>}]} {
    %c0 = arith.constant 0 : index
    %c0_0 = arith.constant 0 : index
    %c0_1 = arith.constant 0 : index
    %c0_2 = arith.constant 0 : index
    %0 = vector.load %arg2[%c0, %c0_0, %c0_1, %c0_2] : memref<1x3x2x128xf32, #tpu.memory_space<vmem>>, vector<1x1x2x128xf32>
    %1 = vector.shape_cast %0 : vector<1x1x2x128xf32> to vector<1x2x128xf32>
    %c0_3 = arith.constant 0 : index
    %c0_4 = arith.constant 0 : index
    %c0_5 = arith.constant 0 : index
    %2 = vector.load %arg3[%c0_3, %c0_4, %c0_5] : memref<1x2x128xf32, #tpu.memory_space<vmem>>, vector<1x2x128xf32>
    tpu.vector_store %arg3[%c0_3, %c0_4, %c0_5], %1 {strides = array<i32>} : memref<1x2x128xf32, #tpu.memory_space<vmem>>, vector<1x2x128xf32>,
    %c0_6 = arith.constant 0 : index
    %c1 = arith.constant 1 : index
    %c0_7 = arith.constant 0 : index
    %c0_8 = arith.constant 0 : index
    %3 = vector.load %arg2[%c0_6, %c1, %c0_7, %c0_8] : memref<1x3x2x128xf32, #tpu.memory_space<vmem>>, vector<1x1x2x128xf32>
    %4 = vector.shape_cast %3 : vector<1x1x2x128xf32> to vector<1x2x128xf32>
    %c0_9 = arith.constant 0 : index
    %c0_10 = arith.constant 0 : index
    %c0_11 = arith.constant 0 : index
    %5 = vector.load %arg4[%c0_9, %c0_10, %c0_11] : memref<1x2x128xf32, #tpu.memory_space<vmem>>, vector<1x2x128xf32>
    tpu.vector_store %arg4[%c0_9, %c0_10, %c0_11], %4 {strides = array<i32>} : memref<1x2x128xf32, #tpu.memory_space<vmem>>, vector<1x2x128xf32>,
    %c0_12 = arith.constant 0 : index
    %c2 = arith.constant 2 : index
    %c0_13 = arith.constant 0 : index
    %c0_14 = arith.constant 0 : index
    %6 = vector.load %arg2[%c0_12, %c2, %c0_13, %c0_14] : memref<1x3x2x128xf32, #tpu.memory_space<vmem>>, vector<1x1x2x128xf32>
    %7 = vector.shape_cast %6 : vector<1x1x2x128xf32> to vector<1x2x128xf32>
    %c0_15 = arith.constant 0 : index
    %c0_16 = arith.constant 0 : index
    %c0_17 = arith.constant 0 : index
    %8 = vector.load %arg5[%c0_15, %c0_16, %c0_17] : memref<1x2x128xf32, #tpu.memory_space<vmem>>, vector<1x2x128xf32>
    tpu.vector_store %arg5[%c0_15, %c0_16, %c0_17], %7 {strides = array<i32>} : memref<1x2x128xf32, #tpu.memory_space<vmem>>, vector<1x2x128xf32>,
    return
  }
  func.func @transform_0(%arg0: i32, %arg1: i32) -> (i32, i32, i32, i32) {
    %c0_i32 = arith.constant 0 : i32
    %c0_i32_0 = arith.constant 0 : i32
    %c0_i32_1 = arith.constant 0 : i32
    return %arg0, %c0_i32, %arg1, %c0_i32_0 : i32, i32, i32, i32
  }
  func.func @transform_1(%arg0: i32, %arg1: i32) -> (i32, i32, i32) {
    %c0_i32 = arith.constant 0 : i32
    %c0_i32_0 = arith.constant 0 : i32
    return %arg0, %arg1, %c0_i32 : i32, i32, i32
  }
  func.func @transform_2(%arg0: i32, %arg1: i32) -> (i32, i32, i32) {
    %c0_i32 = arith.constant 0 : i32
    %c0_i32_0 = arith.constant 0 : i32
    return %arg0, %arg1, %c0_i32 : i32, i32, i32
  }
  func.func @transform_3(%arg0: i32, %arg1: i32) -> (i32, i32, i32) {
    %c0_i32 = arith.constant 0 : i32
    %c0_i32_0 = arith.constant 0 : i32
    return %arg0, %arg1, %c0_i32 : i32, i32, i32
  }
}

</mosaic_0001>

<bundles_post_ra>
// kernel: model_forward.1
= control target key start
LH: loop header
LB: loop body
LE: loop exit
PB: predicated region body
PF: predicated region fallthrough
CT: control target
= control target key end

     0   :  { %s486_s12 = smov 0   ;;  %s488_s13 = smov 0   ;;  %s513_s0 = inlined_call_operand.vmem [shape: f32[2,3,2,128], index: 0, kind: input, shape index: {}]   ;;  %s514_s1 = inlined_call_operand.vmem [shape: f32[2,2,128], index: 1, kind: output, shape index: {0}]   ;;  %s515_s2 = inlined_call_operand.vmem [shape: f32[2,2,128], index: 2, kind: output, shape index: {1}]   ;;  %s516_s3 = inlined_call_operand.vmem [shape: f32[2,2,128], index: 3, kind: output, shape index: {2}]  }
   0x1   :  { %s490_s14 = smov 0  }
   0x2 LB: > { %s26_s15 = sadd.s32 1, %s460_s13  ;;  %p408_p0 = scmp.ge.s32.totalorder %s464_s14, 1  ;;  %s464_s14 = sphi %s490_s14, %s14_s14   ;;  %s460_s13 = sphi %s488_s13, %s518_s13   ;;  %s456_s12 = sphi %s486_s12, %s517_s12  }
   0x3   : > { %p28_p1 = scmp.ge.s32.totalorder %s26_s15, 2  ;;  %p165_p2 = scmp.lt.s32.totalorder %s464_s14, 3 }
   0x5   : > { %s520_s15 = smov (%p28_p1, %s26_s15), 0  ;;  %p166_p3 = pnand %p408_p0, %p165_p2 }
   0x6   : > { %p208_p4 = scmp.lt.s32.totalorder (!%p166_p3), %s456_s12, 1 }
   0x7   : > { %169 = sbr.rel (%p166_p3) target bundleno = 20 (0x14), region = 24 }
   0xc   : > { %s522_s12 = smov (!%p208_p4, %s456_s12), 1 }
   0xd   : > { %s417_s16 = smul.u32 6, %s522_s12  ;;  %s410_s17 = sshll.u32 %s522_s12, 1 }
   0xe   : > { %s222_s20 = scalar_lea.vmem %s514_s1, %s410_s17  ;;  %s229_s26 = scalar_lea.vmem %s515_s2, %s410_s17 }
   0xf   : > { %s215_s23 = scalar_lea.vmem %s513_s0, %s417_s16  ;;  %s236_s29 = scalar_lea.vmem %s516_s3, %s410_s17 }
  0x10   : > { %v237_v0 = vld [vmem:[%s215_s23] sm:$0x3]  ;;  %v413_v1 = vld [vmem:[%s215_s23 + $0x2] sm:$0x3]  ;;  %v414_v2 = vld [vmem:[%s215_s23 + $0x4] sm:$0x3] }
  0x11   : > { %238 = vst [vmem:[%s222_s20] sm:$0x3] %v237_v0 }
  0x12   : > { %241 = vst [vmem:[%s229_s26] sm:$0x3] %v413_v1 }
  0x13   : > { %244 = vst [vmem:[%s236_s29] sm:$0x3] %v414_v2 }
  0x14 PF: > { %s14_s14 = sadd.s32 1, %s464_s14   ;;  %s517_s12 = smov %s460_s13 }
  0x15   : > { %p11_p5 = scmp.ge.s32.totalorder %s14_s14, 4   ;;  %s518_s13 = smov %s520_s15 }
  0x17   :  { %13 = sbr.rel (!%p11_p5) target bundleno = 2 (0x2), region = 80 }

</bundles_post_ra>
